<compile_context>
chip_gen: v6e
topology: v6e:2x2x1
jax: 0.10.0
libtpu: 0.0.40
codegen_flags: <defaults>
</compile_context>

<pallas_src>
import functools

import jax
import jax.numpy as jnp
from jax.experimental import pallas as pl
from jax.experimental.pallas import tpu as pltpu

_LANE = 128      # TPU lane width: output feature dim padded to this
_SUBLANE = 8     # f32 sublane count: batch padded to a multiple of this


def _norm_tanh(h, mask, feat_div, valid_count, eps):
    """Fused single-pass version of the quirky torch 'norm' + tanh."""
    hm = h * mask                     # zero out padded rows for the reductions
    s1 = jnp.sum(hm)                  # sum(h) over valid rows
    s2 = jnp.sum(hm * h)              # sum(h*h) over valid rows (independent of s1)
    avg = s1 / feat_div
    # sum((h - avg)^2) over valid rows == s2 - 2*avg*s1 + count*avg^2
    var = (s2 - 2.0 * avg * s1 + valid_count * avg * avg) / feat_div
    inv = 1.0 / (jnp.sqrt(var) + eps)  # one scalar reciprocal ...
    return jnp.tanh((h - avg) * inv)   # ... broadcast-multiplied, no per-elem divide


def _pi_net_kernel(x_ref, w1_ref, b1_ref, w2_ref, b2_ref, w3_ref, b3_ref,
                   o_ref, *, valid_rows):
    eps = jnp.float32(1e-07)

    x = x_ref[...]                     # (B_pad, 16) f32
    b_pad = x_ref.shape[0]

    # Rows >= valid_rows are zero padding added for sublane alignment; they
    # must be excluded from the whole-tensor sums (the torch "norm" sums over
    # the whole tensor), otherwise the result would change.
    row_ids = jax.lax.broadcasted_iota(jnp.int32, (b_pad, 1), 0)
    mask = (row_ids < valid_rows).astype(jnp.float32)   # (B_pad, 1)

    # ---- linear1: (B,16) @ (16,20) + (1,20), then norm(/20) + tanh ----
    h = jnp.dot(x, w1_ref[...], preferred_element_type=jnp.float32) + b1_ref[...]
    h = _norm_tanh(h, mask, jnp.float32(20.0), jnp.float32(valid_rows * 20), eps)

    # ---- linear2: (B,20) @ (20,40) + (1,40), then norm(/40) + tanh ----
    h = jnp.dot(h, w2_ref[...], preferred_element_type=jnp.float32) + b2_ref[...]
    h = _norm_tanh(h, mask, jnp.float32(40.0), jnp.float32(valid_rows * 40), eps)

    # ---- linear3: (B,40) @ (40,128-padded) + (1,128-padded) ----
    out = jnp.dot(h, w3_ref[...], preferred_element_type=jnp.float32) + b3_ref[...]
    o_ref[...] = out.astype(o_ref.dtype)   # lane-dense (B_pad, 128) store


def pi_net_forward(x, params):
    """x: (B, 16) float32.  params: dict of (w1,b1,w2,b2,w3,b3).  Returns (B, 4)."""
    x = x.astype(jnp.float32)
    B = x.shape[0]
    B_pad = ((B + _SUBLANE - 1) // _SUBLANE) * _SUBLANE
    if B_pad != B:
        x = jnp.pad(x, ((0, B_pad - B), (0, 0)))

    # Pad the last linear's output dim 4 -> 128 with zero columns so the
    # kernel's output store is lane-dense; extra columns are exactly 0.
    n_out = params["w3"].shape[1]
    w3 = jnp.pad(params["w3"], ((0, 0), (0, _LANE - n_out)))
    b3 = jnp.pad(params["b3"], ((0, 0), (0, _LANE - n_out)))

    vmem = pl.BlockSpec(memory_space=pltpu.MemorySpace.VMEM)
    out = pl.pallas_call(
        functools.partial(_pi_net_kernel, valid_rows=B),
        out_shape=jax.ShapeDtypeStruct((B_pad, _LANE), jnp.float32),
        in_specs=[vmem] * 7,
        out_specs=vmem,
        # Single VMEM-resident block: weights + activations are a few KiB.
        # For huge B on v6e raise vmem_limit_bytes; on v7x tile the batch.
    )(
        x,
        params["w1"], params["b1"],
        params["w2"], params["b2"],
        w3, b3,
    )
    return out[:B, :n_out]


def init_params(key):
    """Deterministic init mimicking nn.Linear default: U(-1/sqrt(fan_in), ...)."""
    def linear(key, fan_in, fan_out):
        kw, kb = jax.random.split(key)
        bound = 1.0 / jnp.sqrt(jnp.float32(fan_in))
        # stored as (in, out) so the kernel does x @ w
        w = jax.random.uniform(kw, (fan_in, fan_out), jnp.float32, -bound, bound)
        b = jax.random.uniform(kb, (1, fan_out), jnp.float32, -bound, bound)
        return w, b

    k1, k2, k3 = jax.random.split(key, 3)
    w1, b1 = linear(k1, 16, 20)
    w2, b2 = linear(k2, 20, 40)
    w3, b3 = linear(k3, 40, 4)
    return {"w1": w1, "b1": b1, "w2": w2, "b2": b2, "w3": w3, "b3": b3}


def pi_net_reference(x, p):
    """Pure-JAX reference matching the PyTorch forward exactly (two-pass norm)."""
    eps = 1e-07
    h = x @ p["w1"] + p["b1"]
    avg = jnp.sum(h) / 20.0
    d = h - avg
    std = jnp.sum(d * d) / 20.0
    h = jnp.tanh(d / (jnp.sqrt(std) + eps))
    h = h @ p["w2"] + p["b2"]
    avg = jnp.sum(h) / 40.0
    d = h - avg
    std = jnp.sum(d * d) / 40.0
    h = jnp.tanh(d / (jnp.sqrt(std) + eps))
    out = h @ p["w3"] + p["b3"]
    return out.reshape(-1, 4)


if __name__ == "__main__":
    key = jax.random.PRNGKey(0)
    kx, kp = jax.random.split(key)
    params = init_params(kp)

    # Small batch (exercises the zero-row padding + masked reductions).
    B = 2
    x = jax.random.uniform(kx, (B, 16), jnp.float32)
    out = jax.block_until_ready(pi_net_forward(x, params))
    ref = pi_net_reference(x, params)
    assert out.shape == (B, 4)
    assert jnp.allclose(out, ref, atol=1e-5, rtol=1e-5), (out, ref)

    # Batched use: evaluate all 16 one-hot Frozen-Lake states in one call
    # (amortizes launch cost; no padding needed since 16 % 8 == 0).
    x16 = jnp.eye(16, dtype=jnp.float32)
    out16 = jax.block_until_ready(pi_net_forward(x16, params))
    ref16 = pi_net_reference(x16, params)
    assert out16.shape == (16, 4)
    assert jnp.allclose(out16, ref16, atol=1e-5, rtol=1e-5), (out16, ref16)

    print("KERNEL_OK")
</pallas_src>

<mosaic_0001>
module attributes {stable_mosaic.version = 11 : i64} {
  func.func @_pi_net_kernel(%arg0: memref<8x16xf32, #tpu.memory_space<vmem>>, %arg1: memref<16x20xf32, #tpu.memory_space<vmem>>, %arg2: memref<1x20xf32, #tpu.memory_space<vmem>>, %arg3: memref<20x40xf32, #tpu.memory_space<vmem>>, %arg4: memref<1x40xf32, #tpu.memory_space<vmem>>, %arg5: memref<40x128xf32, #tpu.memory_space<vmem>>, %arg6: memref<1x128xf32, #tpu.memory_space<vmem>>, %arg7: memref<8x128xf32, #tpu.memory_space<vmem>>) attributes {dimension_semantics = [], scalar_prefetch = 0 : i64, scratch_operands = 0 : i64, tpu.core_type = #tpu.core_type<tc>} {
    %c0 = arith.constant 0 : index
    %c0_0 = arith.constant 0 : index
    %0 = vector.load %arg0[%c0, %c0_0] : memref<8x16xf32, #tpu.memory_space<vmem>>, vector<8x16xf32>
    %1 = tpu.iota {dimensions = array<i32: 0>} : vector<8x1xi32>
    %c2_i32 = arith.constant 2 : i32
    %2 = vector.broadcast %c2_i32 : i32 to vector<8x1xi32>
    %3 = arith.cmpi slt, %1, %2 : vector<8x1xi32>
    %4 = arith.extui %3 : vector<8x1xi1> to vector<8x1xi32>
    %5 = arith.sitofp %4 : vector<8x1xi32> to vector<8x1xf32>
    %c0_1 = arith.constant 0 : index
    %c0_2 = arith.constant 0 : index
    %6 = vector.load %arg1[%c0_1, %c0_2] : memref<16x20xf32, #tpu.memory_space<vmem>>, vector<16x20xf32>
    %cst = arith.constant dense<0.000000e+00> : vector<8x20xf32>
    %7 = tpu.matmul %0, %6, %cst {dimension_numbers = #tpu.dot_dimension_numbers<[1], [0], [0], [1], [0, 0, 1, 1], [], []>} : vector<8x16xf32>, vector<16x20xf32>, vector<8x20xf32> -> vector<8x20xf32>
    %c0_3 = arith.constant 0 : index
    %c0_4 = arith.constant 0 : index
    %8 = vector.load %arg2[%c0_3, %c0_4] : memref<1x20xf32, #tpu.memory_space<vmem>>, vector<1x20xf32>
    %9 = vector.broadcast %8 : vector<1x20xf32> to vector<8x20xf32>
    %10 = arith.addf %7, %9 : vector<8x20xf32>
    %11 = vector.broadcast %5 : vector<8x1xf32> to vector<8x20xf32>
    %12 = arith.mulf %10, %11 : vector<8x20xf32>
    %13 = vector.shape_cast %12 : vector<8x20xf32> to vector<1x8x20xf32>
    %cst_5 = arith.constant dense<0.000000e+00> : vector<1xf32>
    %14 = vector.multi_reduction <add>, %13, %cst_5 [1, 2] : vector<1x8x20xf32> to vector<1xf32>
    %15 = vector.shape_cast %14 : vector<1xf32> to vector<1x1x1xf32>
    %16 = vector.extract %15[0, 0, 0] : f32 from vector<1x1x1xf32>
    %17 = arith.mulf %12, %10 : vector<8x20xf32>
    %18 = vector.shape_cast %17 : vector<8x20xf32> to vector<1x8x20xf32>
    %cst_6 = arith.constant dense<0.000000e+00> : vector<1xf32>
    %19 = vector.multi_reduction <add>, %18, %cst_6 [1, 2] : vector<1x8x20xf32> to vector<1xf32>
    %20 = vector.shape_cast %19 : vector<1xf32> to vector<1x1x1xf32>
    %21 = vector.extract %20[0, 0, 0] : f32 from vector<1x1x1xf32>
    %cst_7 = arith.constant 2.000000e+01 : f32
    %22 = arith.divf %16, %cst_7 : f32
    %cst_8 = arith.constant 2.000000e+00 : f32
    %23 = arith.mulf %cst_8, %22 : f32
    %24 = arith.mulf %23, %16 : f32
    %25 = arith.subf %21, %24 : f32
    %cst_9 = arith.constant 4.000000e+01 : f32
    %26 = arith.mulf %cst_9, %22 : f32
    %27 = arith.mulf %26, %22 : f32
    %28 = arith.addf %25, %27 : f32
    %cst_10 = arith.constant 2.000000e+01 : f32
    %29 = arith.divf %28, %cst_10 : f32
    %30 = math.sqrt %29 : f32
    %cst_11 = arith.constant 1.000000e-07 : f32
    %31 = arith.addf %30, %cst_11 : f32
    %cst_12 = arith.constant 1.000000e+00 : f32
    %32 = arith.divf %cst_12, %31 : f32
    %33 = vector.broadcast %22 : f32 to vector<8x20xf32>
    %34 = arith.subf %10, %33 : vector<8x20xf32>
    %35 = vector.broadcast %32 : f32 to vector<8x20xf32>
    %36 = arith.mulf %34, %35 : vector<8x20xf32>
    %37 = math.tanh %36 : vector<8x20xf32>
    %c0_13 = arith.constant 0 : index
    %c0_14 = arith.constant 0 : index
    %38 = vector.load %arg3[%c0_13, %c0_14] : memref<20x40xf32, #tpu.memory_space<vmem>>, vector<20x40xf32>
    %cst_15 = arith.constant dense<0.000000e+00> : vector<8x40xf32>
    %39 = tpu.matmul %37, %38, %cst_15 {dimension_numbers = #tpu.dot_dimension_numbers<[1], [0], [0], [1], [0, 0, 1, 1], [], []>} : vector<8x20xf32>, vector<20x40xf32>, vector<8x40xf32> -> vector<8x40xf32>
    %c0_16 = arith.constant 0 : index
    %c0_17 = arith.constant 0 : index
    %40 = vector.load %arg4[%c0_16, %c0_17] : memref<1x40xf32, #tpu.memory_space<vmem>>, vector<1x40xf32>
    %41 = vector.broadcast %40 : vector<1x40xf32> to vector<8x40xf32>
    %42 = arith.addf %39, %41 : vector<8x40xf32>
    %43 = vector.broadcast %5 : vector<8x1xf32> to vector<8x40xf32>
    %44 = arith.mulf %42, %43 : vector<8x40xf32>
    %45 = vector.shape_cast %44 : vector<8x40xf32> to vector<1x8x40xf32>
    %cst_18 = arith.constant dense<0.000000e+00> : vector<1xf32>
    %46 = vector.multi_reduction <add>, %45, %cst_18 [1, 2] : vector<1x8x40xf32> to vector<1xf32>
    %47 = vector.shape_cast %46 : vector<1xf32> to vector<1x1x1xf32>
    %48 = vector.extract %47[0, 0, 0] : f32 from vector<1x1x1xf32>
    %49 = arith.mulf %44, %42 : vector<8x40xf32>
    %50 = vector.shape_cast %49 : vector<8x40xf32> to vector<1x8x40xf32>
    %cst_19 = arith.constant dense<0.000000e+00> : vector<1xf32>
    %51 = vector.multi_reduction <add>, %50, %cst_19 [1, 2] : vector<1x8x40xf32> to vector<1xf32>
    %52 = vector.shape_cast %51 : vector<1xf32> to vector<1x1x1xf32>
    %53 = vector.extract %52[0, 0, 0] : f32 from vector<1x1x1xf32>
    %cst_20 = arith.constant 4.000000e+01 : f32
    %54 = arith.divf %48, %cst_20 : f32
    %cst_21 = arith.constant 2.000000e+00 : f32
    %55 = arith.mulf %cst_21, %54 : f32
    %56 = arith.mulf %55, %48 : f32
    %57 = arith.subf %53, %56 : f32
    %cst_22 = arith.constant 8.000000e+01 : f32
    %58 = arith.mulf %cst_22, %54 : f32
    %59 = arith.mulf %58, %54 : f32
    %60 = arith.addf %57, %59 : f32
    %cst_23 = arith.constant 4.000000e+01 : f32
    %61 = arith.divf %60, %cst_23 : f32
    %62 = math.sqrt %61 : f32
    %cst_24 = arith.constant 1.000000e-07 : f32
    %63 = arith.addf %62, %cst_24 : f32
    %cst_25 = arith.constant 1.000000e+00 : f32
    %64 = arith.divf %cst_25, %63 : f32
    %65 = vector.broadcast %54 : f32 to vector<8x40xf32>
    %66 = arith.subf %42, %65 : vector<8x40xf32>
    %67 = vector.broadcast %64 : f32 to vector<8x40xf32>
    %68 = arith.mulf %66, %67 : vector<8x40xf32>
    %69 = math.tanh %68 : vector<8x40xf32>
    %c0_26 = arith.constant 0 : index
    %c0_27 = arith.constant 0 : index
    %70 = vector.load %arg5[%c0_26, %c0_27] : memref<40x128xf32, #tpu.memory_space<vmem>>, vector<40x128xf32>
    %cst_28 = arith.constant dense<0.000000e+00> : vector<8x128xf32>
    %71 = tpu.matmul %69, %70, %cst_28 {dimension_numbers = #tpu.dot_dimension_numbers<[1], [0], [0], [1], [0, 0, 1, 1], [], []>} : vector<8x40xf32>, vector<40x128xf32>, vector<8x128xf32> -> vector<8x128xf32>
    %c0_29 = arith.constant 0 : index
    %c0_30 = arith.constant 0 : index
    %72 = vector.load %arg6[%c0_29, %c0_30] : memref<1x128xf32, #tpu.memory_space<vmem>>, vector<1x128xf32>
    %73 = vector.broadcast %72 : vector<1x128xf32> to vector<8x128xf32>
    %74 = arith.addf %71, %73 : vector<8x128xf32>
    %c0_31 = arith.constant 0 : index
    %c0_32 = arith.constant 0 : index
    %75 = vector.load %arg7[%c0_31, %c0_32] : memref<8x128xf32, #tpu.memory_space<vmem>>, vector<8x128xf32>
    tpu.vector_store %arg7[%c0_31, %c0_32], %74 {strides = array<i32>} : memref<8x128xf32, #tpu.memory_space<vmem>>, vector<8x128xf32>,
    return
  }
}

</mosaic_0001>

<bundles_post_ra>
// kernel: tpu_custom_call.1
= control target key start
LH: loop header
LB: loop body
LE: loop exit
PB: predicated region body
PF: predicated region fallthrough
CT: control target
= control target key end

     0   :  { %12 = vsyncpa [#allocation3], 0  ;;  %s783_s0 = inlined_call_operand.hbm [shape: f32[8,16], index: 0, kind: input, shape index: {}]   ;;  %s784_s1 = inlined_call_operand.hbm [shape: f32[16,20], index: 1, kind: input, shape index: {}]   ;;  %s785_s2 = inlined_call_operand.vmem [shape: f32[1,20], index: 2, kind: input, shape index: {}]   ;;  %s786_s3 = inlined_call_operand.hbm [shape: f32[20,40], index: 3, kind: input, shape index: {}]   ;;  %s787_s4 = inlined_call_operand.vmem [shape: f32[1,40], index: 4, kind: input, shape index: {}]   ;;  %s788_s5 = inlined_call_operand.hbm [shape: f32[40,128], index: 5, kind: input, shape index: {}]   ;;  %s789_s6 = inlined_call_operand.vmem [shape: f32[1,128], index: 6, kind: input, shape index: {}]   ;;  %s790_s7 = inlined_call_operand.hbm [shape: f32[8,128], index: 7, kind: output, shape index: {}]  }
   0x1   :  { %13 = vsyncpa [#allocation6], 0 }
   0x2   :  { %14 = vsyncpa [#allocation9], 0 }
   0x3   :  { %15 = vsyncpa [#allocation4], 0  ;;  %s660_s24 = smov [#allocation5]  }
   0x4   :  { %s31_s25 = sshll.u32 %s660_s24, 4  ;;  %s32_s25 = int_to_ptr.vmem [resolvable:$true] %s31_s25 }
   0x5   :  { %s560_s26 = scalar_lea.vmem %s32_s25, 256  ;;  %p565_p1 = scmp.lt.s32.totalorder %s32_s25, %s32_s25 }
   0x6   :  { %p561_p0 = scmp.ne.s32.totalorder %s32_s25, %s560_s26  ;;  %p566_p2 = scmp.lt.s32.totalorder %s560_s26, %s560_s26 }
   0x8   :  { %p567_p3 = por %p566_p2, %p565_p1 }
   0xa   :  { %p568_p4 = pnand %p567_p3, %p561_p0 }
   0xc   :  { %571 = shalt.err (!%p568_p4)
}
   0xd   :  { %s661_s27 = smov 128   ;;  %s662_s28 = smov 8  }
   0xe   :  { %37 = dma.hbm_to_vmem [thread:$0]  %s784_s1, 256, %s32_s25, [#allocation6], %s661_s27, %s661_s27, %s662_s28  }
   0xf   :  { %s663_s8 = smov [#allocation2]   ;;  %s664_s10 = smov [#allocation7]  }
  0x10   :  { %s22_s9 = sshll.u32 %s663_s8, 4  ;;  %s45_s11 = sshll.u32 %s664_s10, 4  ;;  %s23_s9 = int_to_ptr.vmem [resolvable:$true] %s22_s9  ;;  %s46_s11 = int_to_ptr.vmem [resolvable:$true] %s45_s11 }
  0x11   :  { %s580_s12 = scalar_lea.vmem %s23_s9, 128  ;;  %p585_p6 = scmp.lt.s32.totalorder %s23_s9, %s23_s9 }
  0x12   :  { %p581_p5 = scmp.ne.s32.totalorder %s23_s9, %s580_s12  ;;  %p586_p7 = scmp.lt.s32.totalorder %s580_s12, %s580_s12 }
  0x14   :  { %p587_p8 = por %p586_p7, %p585_p6 }
  0x16   :  { %p588_p9 = pnand %p587_p8, %p581_p5 }
  0x18   :  { %591 = shalt.err (!%p588_p9)
}
  0x19   :  { %25 = dma.hbm_to_vmem [thread:$0]  %s783_s0, 128, %s23_s9, [#allocation3]  }
  0x1a   :  { %s600_s15 = scalar_lea.vmem %s46_s11, 384  ;;  %p605_p11 = scmp.lt.s32.totalorder %s46_s11, %s46_s11 }
  0x1b   :  { %p601_p10 = scmp.ne.s32.totalorder %s46_s11, %s600_s15  ;;  %p606_p12 = scmp.lt.s32.totalorder %s600_s15, %s600_s15 }
  0x1d   :  { %p607_p13 = por %p606_p12, %p605_p11 }
  0x1f   :  { %p608_p0 = pnand %p607_p13, %p601_p10 }
  0x21   :  { %611 = shalt.err (!%p608_p0)
}
  0x22   :  { %51 = dma.hbm_to_vmem [thread:$0]  %s786_s3, 384, %s46_s11, [#allocation6], %s661_s27, %s661_s27, %s662_s28  }
  0x23   :  { %s665_s17 = smov [#allocation8]  }
  0x24   :  { %s59_s18 = sshll.u32 %s665_s17, 4  ;;  %s60_s18 = int_to_ptr.vmem [resolvable:$true] %s59_s18 }
  0x25   :  { %s620_s19 = scalar_lea.vmem %s60_s18, 640  ;;  %p625_p2 = scmp.lt.s32.totalorder %s60_s18, %s60_s18 }
  0x26   :  { %p621_p1 = scmp.ne.s32.totalorder %s60_s18, %s620_s19  ;;  %p626_p3 = scmp.lt.s32.totalorder %s620_s19, %s620_s19 }
  0x28   :  { %p627_p4 = por %p626_p3, %p625_p2 }
  0x2a   :  { %p628_p5 = pnand %p627_p4, %p621_p1 }
  0x2c   :  { %631 = shalt.err (!%p628_p5)
}
  0x2d   :  { %65 = dma.hbm_to_vmem [thread:$0]  %s788_s5, 640, %s60_s18, [#allocation9], %s661_s27, %s661_s27, %s662_s28  }
  0x2e   :  { %652 = dma.done.wait [#allocation3], 128  }
  0x2f   :  { %653 = vsyncadd [#allocation3], 4294967168 }
  0x30   :  { %654 = dma.done.wait [#allocation6], 640  }
  0x31   :  { %655 = vsyncadd [#allocation6], 4294966656 }
  0x32   :  { %656 = dma.done.wait [#allocation9], 640  }
  0x33   :  { %657 = vsyncadd [#allocation9], 4294966656  ;;  %v666_v0 = vmov 0.0   ;;  %vm667_vm0 = vmmov 0   ;;  %v87_v1 = vld [vmem:[#allocation5 + $0x8] sm:$0xff]  ;;  %v86_v2 = vld [vmem:[#allocation5] sm:$0xff]  ;;  %v81_v4 = vlaneseq }
  0x34   :  { %486 = vmatprep.subr.mxu1 %v666_v0  ;;  %490 = vmatprep.mubr.msk.f32.mxu1 %vm667_vm0, %v666_v0  ;;  %v80_v3 = vld [vmem:[#allocation2] sm:$0xff]  ;;  %vm95_vm1 = vcmask 130048   ;;  %vm170_vm3 = vcmask 162816   ;;  %v224_v30 = vld [vmem:[#allocation7 + $0x10] sm:$0xf]  ;;  %vm235_vm4 = vcmask 1043456  }
  0x35   :  { %502 = vmatprep.subr.mxu0 %v666_v0  ;;  %512 = vmatprep.mubr.msk.f32.mxu0 %vm667_vm0, %v666_v0  ;;  %v82_v5 = vshrl.u32 %v81_v4, 7  ;;  %v466_v6 = vld [vmem:[%s785_s2] ss:$0 sm:$0xff]  ;;  %v222_v32 = vld [vmem:[#allocation7] sm:$0xff]  ;;  %vm310_vm7 = vcmask 326656  }
  0x36   :  { %487 = vmatpush3.msra.mxu1 %v87_v1  ;;  %v223_v31 = vld [vmem:[#allocation7 + $0x8] sm:$0xff] }
  0x37   :  { %488 = vmatprep.subr.mxu1 %v666_v0  ;;  %vm83_vm2 = vcmp.lt.s32.totalorder %v82_v5, 2  ;;  %v468_v45 = vld [vmem:[%s787_s4] ss:$0 sm:$0xff]  ;;  %v366_v5 = vld [vmem:[#allocation8 + $0x20] sm:$0xff] }
  0x38   :  { %489 = vmatpush3.msra.mxu1 %v86_v2  ;;  %v741_v8 = vsel %vm83_vm2, 1.0, %v666_v0  ;;  %503 = vmatpush3.msra.mxu0 %v366_v5 }
  0x39   :  { %491 = vmatmul.mubr.msk.f32.vlgmr.msra.gmra.mxu1 %vm95_vm1, %v80_v3  ;;  %493 = vmatprep.subr.mxu1 %v666_v0 }
  0x3a   :  { %499 = vmatprep.mubr.msk.f32.mxu1 %vm667_vm0, %v666_v0  ;;  %494 = vmatpush3.msk.msra.mxu1 %vm235_vm4, %v224_v30 }
  0x3b   :  { %495 = vmatprep.subr.mxu1 %v666_v0  ;;  %504 = vmatprep.subr.mxu0 %v666_v0 }
  0x3c   :  { %496 = vmatpush3.msra.mxu1 %v223_v31 }
  0x3d   :  { %497 = vmatprep.subr.mxu1 %v666_v0 }
  0x3e   :  { %498 = vmatpush3.msra.mxu1 %v222_v32 }
  0xf9   :  { %v165_v7 = vpop.f32.mrf.mxu1 }
  0xfa   :  { %v166_v9 = vadd.f32 %v466_v6, %v165_v7  ;;  %v365_v6 = vld [vmem:[#allocation8 + $0x18] sm:$0xff]  ;;  %v364_v7 = vld [vmem:[#allocation8 + $0x10] sm:$0xff] }
  0xfb   :  { %v492_v10 = vpop.f32.mrf.mxu1  ;;  %505 = vmatpush3.msra.mxu0 %v365_v6 }
  0xfc   :  { %v169_v11 = vmul.f32 %v741_v8, %v166_v9  ;;  %506 = vmatprep.subr.mxu0 %v666_v0  ;;  %v363_v10 = vld [vmem:[#allocation8 + $0x8] sm:$0xff] }
  0xfd   :  { %507 = vmatpush3.msra.mxu0 %v364_v7 }
  0xfe   :  { %v171_v12 = vsel %vm170_vm3, %v169_v11, 0.0  ;;  %v181_v13 = vmul.f32 %v169_v11, %v166_v9  ;;  %508 = vmatprep.subr.mxu0 %v666_v0 }
  0xff   :  { %172 = vadd.xlane.f32.xlu0 %v171_v12  ;;  %509 = vmatpush3.msra.mxu0 %v363_v10 }
 0x100   :  { %v182_v14 = vsel %vm170_vm3, %v181_v13, 0.0  ;;  %v362_v13 = vld [vmem:[#allocation8] sm:$0xff]  ;;  %510 = vmatprep.subr.mxu0 %v666_v0  ;;  %v471_v0 = vld [vmem:[%s789_s6] ss:$0 sm:$0xff] }
 0x101   :  { %511 = vmatpush3.msra.mxu0 %v362_v13 }
 0x103   :  { %183 = vadd.xlane.f32.xlu0 %v182_v14 }
 0x188   :  { %v173_v15 = vpop.xlane.xlu0 %172 }
 0x189   :  { %v174_v16 = vrot.slane %v173_v15, 4 }
 0x18b   :  { %v175_v17 = vadd.f32 %v174_v16, %v173_v15 }
 0x18c   :  { %v184_v18 = vpop.xlane.xlu0 %183 }
 0x18d   :  { %v176_v19 = vrot.slane %v175_v17, 2  ;;  %v185_v20 = vrot.slane %v184_v18, 4 }
 0x18f   :  { %v186_v21 = vadd.f32 %v185_v20, %v184_v18  ;;  %v177_v22 = vadd.f32 %v176_v19, %v175_v17 }
 0x191   :  { %v187_v23 = vrot.slane %v186_v21, 2  ;;  %v178_v24 = vrot.slane %v177_v22, 1 }
 0x193   :  { %v188_v25 = vadd.f32 %v187_v23, %v186_v21  ;;  %v179_v26 = vadd.f32 %v178_v24, %v177_v22 }
 0x195   :  { %515 = vpush %v179_v26  ;;  %v189_v27 = vrot.slane %v188_v25, 1 }
 0x197   :  { %v190_v28 = vadd.f32 %v189_v27, %v188_v25 }
 0x199   :  { %517 = vpush %v190_v28 }
 0x1c6   :  { %s516_s2 = spop %515 }
 0x1c7   :  { %s746_s21 = smul.f32 0.05, %s516_s2 }
 0x1c9   :  { %s195_s22 = smul.f32 2.0, %s746_s21  ;;  %v217_v40 = vstv %s746_s21 }
 0x1ca   :  { %s198_s23 = smul.f32 40.0, %s746_s21  ;;  %s518_s25 = spop %517  ;;  %v218_v41 = vsub.f32 %v166_v9, %v217_v40 }
 0x1cb   :  { %s196_s24 = smul.f32 %s516_s2, %s195_s22 }
 0x1cc   :  { %s199_s27 = smul.f32 %s198_s23, %s746_s21  ;;  %s668_s21 = smov [#allocation10]  }
 0x1cd   :  { %s197_s26 = ssub.f32 %s518_s25, %s196_s24  ;;  %s454_s22 = sshll.u32 %s668_s21, 4  ;;  %s455_s22 = int_to_ptr.vmem [resolvable:$true] %s454_s22 }
 0x1ce   :  { %s632_s23 = scalar_lea.vmem %s455_s22, 128  ;;  %p637_p7 = scmp.lt.s32.totalorder %s455_s22, %s455_s22 }
 0x1cf   :  { %s200_s28 = sadd.f32 %s199_s27, %s197_s26  ;;  %p633_p6 = scmp.ne.s32.totalorder %s455_s22, %s632_s23 }
 0x1d0   :  { %p638_p8 = scmp.lt.s32.totalorder %s632_s23, %s632_s23 }
 0x1d1   :  { %s203_s29 = smul.f32 0.05, %s200_s28 }
 0x1d2   :  { %p639_p9 = por %p638_p8, %p637_p7 }
 0x1d3   :  { %v204_v29 = vstv %s203_s29 }
 0x1d4   :  { %540 = vrsqrt.f32 %v204_v29  ;;  %vm207_vm5 = vcmp.eq.f32.partialorder %v204_v29, inf  ;;  %v210_v35 = vand.u32 2147483648, %v204_v29  ;;  %vm209_vm6 = vcmp.eq.f32.partialorder %v204_v29, 0.0  ;;  %p640_p10 = pnand %p639_p9, %p633_p6 }
 0x1e1   :  { %v541_v33 = vpop.eup %540 }
 0x1e2   :  { %v206_v34 = vmul.f32 %v541_v33, %v204_v29 }
 0x1e4   :  { %v208_v36 = vsel %vm207_vm5, %v204_v29, %v206_v34 }
 0x1e5   :  { %v211_v37 = vsel %vm209_vm6, %v210_v35, %v208_v36 }
 0x1e6   :  { %519 = vpush %v211_v37 }
 0x217   :  { %s520_s30 = spop %519 }
 0x218   :  { %s213_s8 = sadd.f32 1e-07, %s520_s30 }
 0x21a   :  { %v214_v38 = vstv %s213_s8 }
 0x21b   :  { %542 = vrcp.f32 %v214_v38 }
 0x228   :  { %v543_v39 = vpop.eup %542 }
 0x229   :  { %521 = vpush %v543_v39 }
 0x25a   :  { %s522_s9 = spop %521 }
 0x25b   :  { %v219_v42 = vstv %s522_s9 }
 0x25c   :  { %v220_v43 = vmul.f32 %v219_v42, %v218_v41 }
 0x25e   :  { %544 = vtanh.f32 %v220_v43 }
 0x26b   :  { %v545_v44 = vpop.eup %544 }
 0x26c   :  { %500 = vmatmul.mubr.msk.f32.vlgmr.msra.gmra.mxu1 %vm170_vm3, %v545_v44 }
 0x32c   :  { %v305_v46 = vpop.f32.mrf.mxu1 }
 0x32d   :  { %v758_v47 = vadd.f32 %v468_v45, %v305_v46 }
 0x32e   :  { %v501_v48 = vpop.f32.mrf.mxu1 }
 0x32f   :  { %v309_v49 = vmul.f32 %v741_v8, %v758_v47 }
 0x331   :  { %v311_v50 = vsel %vm310_vm7, %v309_v49, 0.0  ;;  %v321_v51 = vmul.f32 %v309_v49, %v758_v47 }
 0x332   :  { %312 = vadd.xlane.f32.xlu1 %v311_v50 }
 0x333   :  { %v322_v52 = vsel %vm310_vm7, %v321_v51, 0.0 }
 0x336   :  { %323 = vadd.xlane.f32.xlu1 %v322_v52 }
 0x3bb   :  { %v313_v53 = vpop.xlane.xlu1 %312 }
 0x3bc   :  { %v314_v54 = vrot.slane %v313_v53, 4 }
 0x3be   :  { %v315_v55 = vadd.f32 %v314_v54, %v313_v53 }
 0x3bf   :  { %v324_v56 = vpop.xlane.xlu1 %323 }
 0x3c0   :  { %v316_v57 = vrot.slane %v315_v55, 2  ;;  %v325_v58 = vrot.slane %v324_v56, 4 }
 0x3c2   :  { %v326_v59 = vadd.f32 %v325_v58, %v324_v56  ;;  %v317_v60 = vadd.f32 %v316_v57, %v315_v55 }
 0x3c4   :  { %v327_v61 = vrot.slane %v326_v59, 2  ;;  %v318_v62 = vrot.slane %v317_v60, 1 }
 0x3c6   :  { %v328_v63 = vadd.f32 %v327_v61, %v326_v59  ;;  %v319_v1 = vadd.f32 %v318_v62, %v317_v60 }
 0x3c8   :  { %523 = vpush %v319_v1  ;;  %v329_v2 = vrot.slane %v328_v63, 1 }
 0x3ca   :  { %v330_v3 = vadd.f32 %v329_v2, %v328_v63 }
 0x3cc   :  { %525 = vpush %v330_v3 }
 0x3f9   :  { %s524_s4 = spop %523 }
 0x3fa   :  { %s765_s12 = smul.f32 0.025, %s524_s4 }
 0x3fc   :  { %s335_s13 = smul.f32 2.0, %s765_s12  ;;  %v357_v17 = vstv %s765_s12 }
 0x3fd   :  { %s338_s14 = smul.f32 80.0, %s765_s12  ;;  %s526_s1 = spop %525  ;;  %v358_v18 = vsub.f32 %v758_v47, %v357_v17 }
 0x3fe   :  { %s336_s15 = smul.f32 %s524_s4, %s335_s13 }
 0x3ff   :  { %s339_s17 = smul.f32 %s338_s14, %s765_s12 }
 0x400   :  { %s337_s16 = ssub.f32 %s526_s1, %s336_s15 }
 0x402   :  { %s340_s18 = sadd.f32 %s339_s17, %s337_s16 }
 0x404   :  { %s343_s19 = smul.f32 0.025, %s340_s18 }
 0x406   :  { %v344_v4 = vstv %s343_s19 }
 0x407   :  { %546 = vrsqrt.f32 %v344_v4  ;;  %vm347_vm8 = vcmp.eq.f32.partialorder %v344_v4, inf  ;;  %v350_v11 = vand.u32 2147483648, %v344_v4  ;;  %vm349_vm9 = vcmp.eq.f32.partialorder %v344_v4, 0.0 }
 0x414   :  { %v547_v8 = vpop.eup %546 }
 0x415   :  { %v346_v9 = vmul.f32 %v547_v8, %v344_v4 }
 0x417   :  { %v348_v12 = vsel %vm347_vm8, %v344_v4, %v346_v9 }
 0x418   :  { %v351_v14 = vsel %vm349_vm9, %v350_v11, %v348_v12 }
 0x419   :  { %527 = vpush %v351_v14 }
 0x44a   :  { %s528_s0 = spop %527 }
 0x44b   :  { %s353_s20 = sadd.f32 1e-07, %s528_s0 }
 0x44d   :  { %v354_v15 = vstv %s353_s20 }
 0x44e   :  { %548 = vrcp.f32 %v354_v15 }
 0x45b   :  { %v549_v16 = vpop.eup %548 }
 0x45c   :  { %529 = vpush %v549_v16 }
 0x48d   :  { %s530_s3 = spop %529 }
 0x48e   :  { %v359_v19 = vstv %s530_s3 }
 0x48f   :  { %v360_v20 = vmul.f32 %v359_v19, %v358_v18 }
 0x491   :  { %550 = vtanh.f32 %v360_v20 }
 0x49e   :  { %v551_v21 = vpop.eup %550 }
 0x49f   :  { %513 = vmatmul.mubr.msk.f32.vlgmr.msra.gmra.mxu0 %vm310_vm7, %v551_v21 }
 0x55f   :  { %v443_v22 = vpop.f32.mrf.mxu0 }
 0x560   :  { %v444_v23 = vadd.f32 %v471_v0, %v443_v22 }
 0x561   :  { %v514_v24 = vpop.f32.mrf.mxu0 }
 0x562   :  { %447 = vst [vmem:[#allocation10] sm:$0xff] %v444_v23 }
 0x563   :  { %643 = shalt.err (!%p640_p10)
}
 0x564   :  { %457 = dma.vmem_to_hbm [thread:$0]  %s455_s22, 128, %s790_s7, [#allocation4]  }
 0x565   :  { %658 = dma.done.wait [#allocation4], 128  }
 0x566   :  { %659 = vsyncadd [#allocation4], 4294967168 }
 0x567   :  { %461 = vsyncpa [#allocation3], 1 }
 0x568   :  { %462 = vsyncpa [#allocation6], 1 }
 0x569   :  { %463 = vsyncpa [#allocation9], 1 }
 0x56a   :  { %464 = vsyncpa [#allocation4], 1 }

</bundles_post_ra>
